<compile_context>
chip_gen: v6e
topology: v6e:2x2x1
jax: 0.10.0
libtpu: 0.0.40
codegen_flags: <defaults>
</compile_context>

<pallas_src>
import functools
import math

import jax
import jax.numpy as jnp
from jax.experimental import pallas as pl
from jax.experimental.pallas import tpu as pltpu


_SUBLANE = 8
_LANE = 128


def _round_up(x, m):
    return ((x + m - 1) // m) * m


def _gather_kernel(ids_ref, table_ref, out_ref, sem):
    """out_ref[t, :] = table_ref[ids[tile_base + t], :] for this tile's tokens.

    ids_ref  : (n_pad,) int32, SMEM (scalar prefetch).
    table_ref: (V, D) embedding table.  Either a raw HBM ref (large vocab) or a
               VMEM-resident block (small-vocab fast path); the per-row async
               copies work identically for both sources.
    out_ref  : (tile_n, D) VMEM output block -- rows are DMA'd directly into it
               (no staging scratch, no vector load/store traffic).
    sem      : single DMA semaphore shared by every row copy of this tile.
    """
    tile_n = out_ref.shape[0]
    base = pl.program_id(0) * tile_n

    unroll = 8  # tile_n is always a multiple of 8 (see wrapper).

    # Issue one row-gather DMA per token; 8 copies per loop iteration so the
    # scalar work for row t+1 overlaps the descriptor push of row t.
    @pl.loop(0, tile_n // unroll)
    def _(blk):
        t0 = pl.multiple_of(blk * unroll, unroll)
        for u in range(unroll):
            t = t0 + u
            row = ids_ref[base + t]
            pltpu.make_async_copy(
                table_ref.at[pl.ds(row, 1), :],
                out_ref.at[pl.ds(t, 1), :],
                sem,
            ).start()

    # Single aggregate drain: the row copies all signal `sem` and together
    # cover exactly the (tile_n, D) output block, so one wait sized to the
    # whole block (src/dst below only supply the size) retires every
    # outstanding copy.  NB: this bookkeeping requires each issued copy to be
    # exactly one D-wide row of out_ref; keep the two in sync.
    pltpu.make_async_copy(out_ref, out_ref, sem).wait()


@functools.partial(jax.jit, static_argnames=("tile_n", "force_hbm_table"))
def word_embedding_forward(words, weight, *, tile_n=1024, force_hbm_table=False):
    """words: int32 [...]; weight: [V, D]  ->  weight[words] : [..., D]."""
    v, d = weight.shape
    lead_shape = words.shape
    n = math.prod(lead_shape)
    itemsize = jnp.dtype(weight.dtype).itemsize

    # Out-of-range ids would become out-of-bounds HBM DMAs (device fault under
    # the default DMA bounds check), so clamp -- O(N), negligible vs the gather.
    ids = jnp.clip(words.reshape(-1).astype(jnp.int32), 0, v - 1)

    # ---- VMEM budgeting --------------------------------------------------
    # Conservative 12 MiB working-set target: fits v5e's 16 MiB scoped-VMEM
    # default (v6e/v7x default 32 MiB; v7x physical VMEM is only 64 MiB), so
    # no vmem_limit_bytes override is needed.  To push tile_n further, raise
    # the budget and set pltpu.CompilerParams(vmem_limit_bytes=...).
    d_lanes = _round_up(d, _LANE)                       # per-row VMEM layout
    table_vmem = _round_up(v, _SUBLANE) * d_lanes * itemsize
    vmem_budget = 12 * 1024 * 1024

    # Small-table fast path: keep the table resident in VMEM (budget 2x for the
    # pipeline's buffering) so row gathers are on-chip instead of tiny HBM reads.
    small_table = (not force_hbm_table) and (2 * table_vmem <= vmem_budget // 2)

    out_budget = vmem_budget - (2 * table_vmem if small_table else 0)
    cap_vmem = (out_budget // (2 * d_lanes * itemsize)) // _SUBLANE * _SUBLANE
    # Keep >= 2 grid steps so both v7x TensorCores get token tiles.
    cap_cores = _round_up(-(-n // 2), _SUBLANE)
    tile = int(min(tile_n, max(cap_vmem, _SUBLANE), cap_cores))
    tile = max(_SUBLANE, (tile // _SUBLANE) * _SUBLANE)

    n_pad = _round_up(n, tile)
    if n_pad != n:
        # Padded slots gather row 0 (harmless); sliced off below.  Bounding the
        # issue loop by the real token count would need a dynamic-size drain,
        # so we accept <= tile-1 wasted row gathers in the last tile.
        ids = jnp.pad(ids, (0, n_pad - n))
    # NOTE: ids are scalar-prefetched into SMEM (pads to next_pow2(4*n_pad)
    # bytes); for token counts beyond ~100K per call, chunk at the wrapper (or
    # switch ids to a per-tile SMEM BlockSpec).

    if small_table:
        # Resident table: same block every grid step -> copied from HBM once.
        table_spec = pl.BlockSpec((v, d), lambda i, ids_smem: (0, 0))
    else:
        # Large table stays in HBM; rows are DMA-gathered straight from it.
        table_spec = pl.BlockSpec(memory_space=pl.ANY)

    out = pl.pallas_call(
        _gather_kernel,
        out_shape=jax.ShapeDtypeStruct((n_pad, d), weight.dtype),
        grid_spec=pltpu.PrefetchScalarGridSpec(
            num_scalar_prefetch=1,                        # ids -> SMEM
            grid=(n_pad // tile,),
            in_specs=[table_spec],
            out_specs=pl.BlockSpec((tile, d), lambda i, ids_smem: (i, 0)),
            scratch_shapes=[pltpu.SemaphoreType.DMA],     # shared row-DMA sem
        ),
        compiler_params=pltpu.CompilerParams(
            dimension_semantics=("parallel",),            # independent tiles
        ),
    )(ids, weight)

    return out[:n].reshape(*lead_shape, d)


def build_params(key, nr_words, nr_extra_words, embedding_dim):
    """Deterministic synthetic parameters mirroring the module's __init__."""
    k_we, k_extra = jax.random.split(key)
    word_embeddings = jax.random.normal(
        k_we, (nr_words, embedding_dim), dtype=jnp.float32
    )
    mean = jnp.mean(word_embeddings)
    std = jnp.std(word_embeddings)
    # reset_parameters(): extra rows ~ Normal(mean(word_emb), std(word_emb))
    extra = mean + std * jax.random.normal(
        k_extra, (nr_extra_words, embedding_dim), dtype=jnp.float32
    )
    weight = jnp.concatenate([word_embeddings, extra], axis=0)  # [V_tot, D]
    return weight


if __name__ == "__main__":
    key = jax.random.PRNGKey(0)
    k_params, k_words = jax.random.split(key)

    nr_words = 10
    nr_extra_words = 3
    embedding_dim = 32
    batch, seq = 2, 8

    weight = build_params(k_params, nr_words, nr_extra_words, embedding_dim)
    nr_tot_words = nr_words + nr_extra_words

    words = jax.random.randint(
        k_words, (batch, seq), minval=0, maxval=nr_tot_words, dtype=jnp.int32
    )

    # Reference: plain JAX gather -- the DMA gather is bit-exact.
    ref = weight[words]

    # Default path: 13x32 table (~8 KiB padded) -> VMEM-resident fast path.
    out = jax.block_until_ready(word_embedding_forward(words, weight))
    assert out.shape == (batch, seq, embedding_dim)
    assert jnp.array_equal(out, ref)

    # Large-vocab configuration (table kept in HBM, rows gathered by DMA):
    # exercise it too so both code paths are verified on-device.
    out_hbm = jax.block_until_ready(
        word_embedding_forward(words, weight, force_hbm_table=True)
    )
    assert jnp.array_equal(out_hbm, ref)

    # TODO(synk): padding_idx only affects init/gradients in PyTorch, so it has
    # no forward-pass equivalent here; a backward kernel would need to mask it.

    print("KERNEL_OK")
</pallas_src>

<mosaic_0001>
module attributes {stable_mosaic.version = 11 : i64} {
  func.func @_gather_kernel(%arg0: i32, %arg1: memref<16xi32, #tpu.memory_space<smem>>, %arg2: memref<13x32xf32, #tpu.memory_space<vmem>>, %arg3: memref<8x32xf32, #tpu.memory_space<vmem>>, %arg4: memref<!tpu.dma_semaphore, #tpu.memory_space<semaphore_mem>>) attributes {dimension_semantics = [#tpu.dimension_semantics<parallel>], iteration_bounds = array<i64: 2>, scalar_prefetch = 1 : i64, scratch_operands = 1 : i64, tpu.core_type = #tpu.core_type<tc>, window_params = [{pipeline_mode = #tpu.pipeline_mode<synchronous>, transform_indices = @transform_0, window_bounds = array<i64: 13, 32>}, {transform_indices = @transform_1, window_bounds = array<i64: 8, 32>}]} {
    %c8_i32 = arith.constant 8 : i32
    %0 = arith.muli %arg0, %c8_i32 : i32
    %c0_i32 = arith.constant 0 : i32
    %c1_i32 = arith.constant 1 : i32
    %1 = arith.muli %c0_i32, %c1_i32 : i32
    %c0_i32_0 = arith.constant 0 : i32
    %2 = arith.addi %c0_i32_0, %1 : i32
    %c8_i32_1 = arith.constant 8 : i32
    %3 = arith.muli %2, %c8_i32_1 : i32
    %4 = tpu.assume_multiple %3, 8 : i32
    %c0_i32_2 = arith.constant 0 : i32
    %5 = arith.addi %4, %c0_i32_2 : i32
    %6 = arith.addi %0, %5 : i32
    %7 = arith.index_cast %6 : i32 to index
    %8 = memref.load %arg1[%7] : memref<16xi32, #tpu.memory_space<smem>>
    %c0_i32_3 = arith.constant 0 : i32
    %9 = tpu.memref_slice %arg2[%8, %c0_i32_3] : memref<13x32xf32, #tpu.memory_space<vmem>> -> memref<1x32xf32, #tpu.memory_space<vmem>>
    %c0_i32_4 = arith.constant 0 : i32
    %10 = tpu.memref_slice %arg3[%5, %c0_i32_4] : memref<8x32xf32, #tpu.memory_space<vmem>> -> memref<1x32xf32, #tpu.memory_space<vmem>>
    tpu.enqueue_dma source(%9 : memref<1x32xf32, #tpu.memory_space<vmem>>) target(%10 : memref<1x32xf32, #tpu.memory_space<vmem>>) target_semaphore(%arg4 : memref<!tpu.dma_semaphore, #tpu.memory_space<semaphore_mem>>)
    %c1_i32_5 = arith.constant 1 : i32
    %11 = arith.addi %4, %c1_i32_5 : i32
    %12 = arith.addi %0, %11 : i32
    %13 = arith.index_cast %12 : i32 to index
    %14 = memref.load %arg1[%13] : memref<16xi32, #tpu.memory_space<smem>>
    %c0_i32_6 = arith.constant 0 : i32
    %15 = tpu.memref_slice %arg2[%14, %c0_i32_6] : memref<13x32xf32, #tpu.memory_space<vmem>> -> memref<1x32xf32, #tpu.memory_space<vmem>>
    %c0_i32_7 = arith.constant 0 : i32
    %16 = tpu.memref_slice %arg3[%11, %c0_i32_7] : memref<8x32xf32, #tpu.memory_space<vmem>> -> memref<1x32xf32, #tpu.memory_space<vmem>>
    tpu.enqueue_dma source(%15 : memref<1x32xf32, #tpu.memory_space<vmem>>) target(%16 : memref<1x32xf32, #tpu.memory_space<vmem>>) target_semaphore(%arg4 : memref<!tpu.dma_semaphore, #tpu.memory_space<semaphore_mem>>)
    %c2_i32 = arith.constant 2 : i32
    %17 = arith.addi %4, %c2_i32 : i32
    %18 = arith.addi %0, %17 : i32
    %19 = arith.index_cast %18 : i32 to index
    %20 = memref.load %arg1[%19] : memref<16xi32, #tpu.memory_space<smem>>
    %c0_i32_8 = arith.constant 0 : i32
    %21 = tpu.memref_slice %arg2[%20, %c0_i32_8] : memref<13x32xf32, #tpu.memory_space<vmem>> -> memref<1x32xf32, #tpu.memory_space<vmem>>
    %c0_i32_9 = arith.constant 0 : i32
    %22 = tpu.memref_slice %arg3[%17, %c0_i32_9] : memref<8x32xf32, #tpu.memory_space<vmem>> -> memref<1x32xf32, #tpu.memory_space<vmem>>
    tpu.enqueue_dma source(%21 : memref<1x32xf32, #tpu.memory_space<vmem>>) target(%22 : memref<1x32xf32, #tpu.memory_space<vmem>>) target_semaphore(%arg4 : memref<!tpu.dma_semaphore, #tpu.memory_space<semaphore_mem>>)
    %c3_i32 = arith.constant 3 : i32
    %23 = arith.addi %4, %c3_i32 : i32
    %24 = arith.addi %0, %23 : i32
    %25 = arith.index_cast %24 : i32 to index
    %26 = memref.load %arg1[%25] : memref<16xi32, #tpu.memory_space<smem>>
    %c0_i32_10 = arith.constant 0 : i32
    %27 = tpu.memref_slice %arg2[%26, %c0_i32_10] : memref<13x32xf32, #tpu.memory_space<vmem>> -> memref<1x32xf32, #tpu.memory_space<vmem>>
    %c0_i32_11 = arith.constant 0 : i32
    %28 = tpu.memref_slice %arg3[%23, %c0_i32_11] : memref<8x32xf32, #tpu.memory_space<vmem>> -> memref<1x32xf32, #tpu.memory_space<vmem>>
    tpu.enqueue_dma source(%27 : memref<1x32xf32, #tpu.memory_space<vmem>>) target(%28 : memref<1x32xf32, #tpu.memory_space<vmem>>) target_semaphore(%arg4 : memref<!tpu.dma_semaphore, #tpu.memory_space<semaphore_mem>>)
    %c4_i32 = arith.constant 4 : i32
    %29 = arith.addi %4, %c4_i32 : i32
    %30 = arith.addi %0, %29 : i32
    %31 = arith.index_cast %30 : i32 to index
    %32 = memref.load %arg1[%31] : memref<16xi32, #tpu.memory_space<smem>>
    %c0_i32_12 = arith.constant 0 : i32
    %33 = tpu.memref_slice %arg2[%32, %c0_i32_12] : memref<13x32xf32, #tpu.memory_space<vmem>> -> memref<1x32xf32, #tpu.memory_space<vmem>>
    %c0_i32_13 = arith.constant 0 : i32
    %34 = tpu.memref_slice %arg3[%29, %c0_i32_13] : memref<8x32xf32, #tpu.memory_space<vmem>> -> memref<1x32xf32, #tpu.memory_space<vmem>>
    tpu.enqueue_dma source(%33 : memref<1x32xf32, #tpu.memory_space<vmem>>) target(%34 : memref<1x32xf32, #tpu.memory_space<vmem>>) target_semaphore(%arg4 : memref<!tpu.dma_semaphore, #tpu.memory_space<semaphore_mem>>)
    %c5_i32 = arith.constant 5 : i32
    %35 = arith.addi %4, %c5_i32 : i32
    %36 = arith.addi %0, %35 : i32
    %37 = arith.index_cast %36 : i32 to index
    %38 = memref.load %arg1[%37] : memref<16xi32, #tpu.memory_space<smem>>
    %c0_i32_14 = arith.constant 0 : i32
    %39 = tpu.memref_slice %arg2[%38, %c0_i32_14] : memref<13x32xf32, #tpu.memory_space<vmem>> -> memref<1x32xf32, #tpu.memory_space<vmem>>
    %c0_i32_15 = arith.constant 0 : i32
    %40 = tpu.memref_slice %arg3[%35, %c0_i32_15] : memref<8x32xf32, #tpu.memory_space<vmem>> -> memref<1x32xf32, #tpu.memory_space<vmem>>
    tpu.enqueue_dma source(%39 : memref<1x32xf32, #tpu.memory_space<vmem>>) target(%40 : memref<1x32xf32, #tpu.memory_space<vmem>>) target_semaphore(%arg4 : memref<!tpu.dma_semaphore, #tpu.memory_space<semaphore_mem>>)
    %c6_i32 = arith.constant 6 : i32
    %41 = arith.addi %4, %c6_i32 : i32
    %42 = arith.addi %0, %41 : i32
    %43 = arith.index_cast %42 : i32 to index
    %44 = memref.load %arg1[%43] : memref<16xi32, #tpu.memory_space<smem>>
    %c0_i32_16 = arith.constant 0 : i32
    %45 = tpu.memref_slice %arg2[%44, %c0_i32_16] : memref<13x32xf32, #tpu.memory_space<vmem>> -> memref<1x32xf32, #tpu.memory_space<vmem>>
    %c0_i32_17 = arith.constant 0 : i32
    %46 = tpu.memref_slice %arg3[%41, %c0_i32_17] : memref<8x32xf32, #tpu.memory_space<vmem>> -> memref<1x32xf32, #tpu.memory_space<vmem>>
    tpu.enqueue_dma source(%45 : memref<1x32xf32, #tpu.memory_space<vmem>>) target(%46 : memref<1x32xf32, #tpu.memory_space<vmem>>) target_semaphore(%arg4 : memref<!tpu.dma_semaphore, #tpu.memory_space<semaphore_mem>>)
    %c7_i32 = arith.constant 7 : i32
    %47 = arith.addi %4, %c7_i32 : i32
    %48 = arith.addi %0, %47 : i32
    %49 = arith.index_cast %48 : i32 to index
    %50 = memref.load %arg1[%49] : memref<16xi32, #tpu.memory_space<smem>>
    %c0_i32_18 = arith.constant 0 : i32
    %51 = tpu.memref_slice %arg2[%50, %c0_i32_18] : memref<13x32xf32, #tpu.memory_space<vmem>> -> memref<1x32xf32, #tpu.memory_space<vmem>>
    %c0_i32_19 = arith.constant 0 : i32
    %52 = tpu.memref_slice %arg3[%47, %c0_i32_19] : memref<8x32xf32, #tpu.memory_space<vmem>> -> memref<1x32xf32, #tpu.memory_space<vmem>>
    tpu.enqueue_dma source(%51 : memref<1x32xf32, #tpu.memory_space<vmem>>) target(%52 : memref<1x32xf32, #tpu.memory_space<vmem>>) target_semaphore(%arg4 : memref<!tpu.dma_semaphore, #tpu.memory_space<semaphore_mem>>)
    %c1_i32_20 = arith.constant 1 : i32
    tpu.wait_dma2 semaphore(%arg4 : memref<!tpu.dma_semaphore, #tpu.memory_space<semaphore_mem>>) src(%arg3 : memref<8x32xf32, #tpu.memory_space<vmem>>) dst(%arg3 : memref<8x32xf32, #tpu.memory_space<vmem>>)
    return
  }
  func.func @transform_0(%arg0: i32, %arg1: memref<16xi32, #tpu.memory_space<smem>>) -> (i32, i32) {
    %c0_i32 = arith.constant 0 : i32
    %c0_i32_0 = arith.constant 0 : i32
    %c0_i32_1 = arith.constant 0 : i32
    return %c0_i32, %c0_i32_0 : i32, i32
  }
  func.func @transform_1(%arg0: i32, %arg1: memref<16xi32, #tpu.memory_space<smem>>) -> (i32, i32) {
    %c0_i32 = arith.constant 0 : i32
    %c0_i32_0 = arith.constant 0 : i32
    return %arg0, %c0_i32 : i32, i32
  }
}

</mosaic_0001>

<bundles_post_ra>
// kernel: word_embedding_forward.1
= control target key start
LH: loop header
LB: loop body
LE: loop exit
PB: predicated region body
PF: predicated region fallthrough
CT: control target
= control target key end

     0   :  { %s1044_s0 = inlined_call_operand.vmem [shape: s32[16], index: 0, kind: input, shape index: {}]   ;;  %s1045_s1 = inlined_call_operand.hbm [shape: f32[13,32], index: 1, kind: input, shape index: {}]   ;;  %s1046_s2 = inlined_call_operand.hbm [shape: f32[16,32], index: 2, kind: output, shape index: {}]  }
   0x1   :  { %s7_s11 = sshll.u32 %s1044_s0, 4  ;;  %s8_s11 = int_to_ptr.vmem [resolvable:$true] %s7_s11 }
   0x2   :  { %s787_s12 = scalar_lea.vmem %s8_s11, 16  ;;  %p792_p1 = scmp.lt.s32.totalorder %s8_s11, %s8_s11 }
   0x3   :  { %p788_p0 = scmp.ne.s32.totalorder %s8_s11, %s787_s12  ;;  %p793_p2 = scmp.lt.s32.totalorder %s787_s12, %s787_s12 }
   0x5   :  { %p794_p3 = por %p793_p2, %p792_p1 }
   0x7   :  { %p795_p4 = pnand %p794_p3, %p788_p0 }
   0x9   :  { %798 = shalt.err (!%p795_p4)  }
   0xa   :  { %s895_s13 = smov [#allocation4]  }
   0xb   :  { %10 = dma.vmem_to_smem %s8_s11, 16, %s895_s13, [#allocation3] }
   0xc   :  { %867 = dma.done.wait [#allocation3], 16 }
   0xd   :  { %868 = vsyncadd [#allocation3], 4294967280 }
   0xe   :  { %12 = sfence }
   0xf   :  { %13 = vsyncpa [#allocation6], 0 }
  0x10   :  { %14 = vsyncpa [#allocation7], 0 }
  0x11   :  { %16 = vsyncpa [#allocation7 + $0x1], 0  ;;  %s918_s14 = smov 0   ;;  %s920_s15 = smov 0  }
  0x12   :  { %s922_s0 = smov 0   ;;  %s924_s16 = smov 0  }
  0x13 LB: > { %s939_s17 = sadd.s32 4294967295, %s893_s16   ;;  %s708_s18 = sadd.s32 4294967294, %s893_s16   ;;  %s893_s16 = sphi %s924_s16, %s1054_s16   ;;  %s889_s0 = sphi %s922_s0, %s1053_s0   ;;  %s885_s15 = sphi %s920_s15, %s1052_s15   ;;  %s881_s14 = sphi %s918_s14, %s1051_s14  }
  0x14   : > { %s943_s19 = sadd.s32 1, %s893_s16   ;;  %s50_s20 = sadd.s32 1, %s889_s0 }
  0x15   : > { %s47_s21 = ssub.s32 %s893_s16, %s943_s19  ;;  %p60_p5 = scmp.ne.s32.totalorder %s889_s0, %s885_s15 }
  0x16   : > { %p48_p6 = scmp.eq.s32.totalorder %s47_s21, 0  ;;  %p61_p7 = scmp.eq.s32.totalorder %s939_s17, 1 }
  0x17   : > { %p66_p8 = scmp.ne.s32.totalorder %s885_s15, %s881_s14  ;;  %p67_p9 = scmp.eq.s32.totalorder %s708_s18, 1 }
  0x18   : > { %s954_s22 = scalar_select %p48_p6, %s889_s0, %s50_s20  }
  0x19   : > { %p956_p10 = por %p61_p7, %p60_p5  ;;  %p960_p11 = por %p67_p9, %p66_p8 }
  0x1a   : > { %p709_p12 = scmp.ge.s32.totalorder %s893_s16, 1  ;;  %p74_p13 = scmp.lt.s32.totalorder %s893_s16, 3 }
  0x1b   : > { %s1048_s24 = scalar_select %p960_p11, 1, 0 }
  0x1c   : > { %p748_p0 = scmp.eq.s32.totalorder %s939_s17, 0  ;;  %p967_p1 = pnand %p709_p12, %p74_p13 }
  0x1d   : > { %s896_s26 = smov [#allocation5]  }
  0x1e   : > { %s86_s27 = sshll.u32 %s896_s26, 4  ;;  %p740_p2 = pneg %p967_p1  ;;  %s87_s27 = int_to_ptr.vmem [resolvable:$true] %s86_s27 }
  0x1f   : > { %s810_s28 = scalar_lea.vmem %s87_s27, 256  ;;  %p818_p8 = scmp.lt.s32.totalorder %s87_s27, %s87_s27 }
  0x20   : > { %p741_p3 = pnand %p748_p0, %p740_p2  ;;  %p811_p5 = scmp.ne.s32.totalorder %s87_s27, %s810_s28 }
  0x21   : > { %p819_p9 = scmp.lt.s32.totalorder %s810_s28, %s810_s28 }
  0x22   : > { %p801_p4 = pneg %p741_p3 }
  0x23   : > { %p820_p11 = por %p819_p9, %p818_p8 }
  0x24   : > { %p813_p6 = pnand %p811_p5, %p801_p4 }
  0x26   : > { %p814_p7 = pneg %p813_p6 }
  0x28   : > { %p821_p12 = pnand %p820_p11, %p814_p7 }
  0x2a   : > { %824 = shalt.err (!%p821_p12)
}
  0x2b   : > { %s897_s29 = smov 128   ;;  %s898_s30 = smov 8  }
  0x2c   : > { %743 = dma.hbm_to_vmem [thread:$0]  (!%p741_p3), %s1045_s1, 256, %s87_s27, [#allocation6], %s897_s29, %s897_s29, %s898_s30  }
  0x2d   : > { %102 = sbr.rel (%p967_p1) target bundleno = 156 (0x9c), region = 24 }
  0x32   : > { %870 = dma.done.wait (%p748_p0), [#allocation6], 256  }
  0x33   : > { %872 = vsyncadd (%p748_p0), [#allocation6], 4294967040  ;;  %s985_s5 = sshll.u32 %s939_s17, 3  ;;  %s114_s6 = sand.u32 1, %s885_s15  }
  0x34   : > { %s119_s7 = sld [smem:[#allocation4 + %s985_s5]]  ;;  %s713_s8 = sshll.u32 %s114_s6, 3 }
  0x35   : > { %s991_s10 = scalar_lea.vmem [#allocation8], %s713_s8 }
  0x3a   : > { %s120_s9 = scalar_lea.vmem [#allocation5], %s119_s7 }
  0x3b   : > { %v139_v0 = vld [vmem:[%s120_s9] sm:$0x1] }
  0x3c   : > { %140 = vst [vmem:[%s991_s10] sm:$0x1] %v139_v0 }
  0x3d   : > { %166 = vsyncadd [#allocation2], 16  ;;  %s168_s11 = sadd.s32 1, %s985_s5 }
  0x3e   : > { %s169_s12 = sld [smem:[#allocation4 + %s168_s11]] }
  0x44   : > { %s170_s13 = scalar_lea.vmem [#allocation5], %s169_s12 }
  0x45   : > { %v190_v1 = vld [vmem:[%s170_s13] sm:$0x1] }
  0x46   : > { %716 = vst [vmem:[%s991_s10 + $0x1] sm:$0x1] %v190_v1 }
  0x47   : > { %217 = vsyncadd [#allocation2], 16  ;;  %s219_s18 = sadd.s32 2, %s985_s5 }
  0x48   : > { %s220_s20 = sld [smem:[#allocation4 + %s219_s18]] }
  0x4e   : > { %s221_s21 = scalar_lea.vmem [#allocation5], %s220_s20 }
  0x4f   : > { %v241_v2 = vld [vmem:[%s221_s21] sm:$0x1] }
  0x50   : > { %718 = vst [vmem:[%s991_s10 + $0x2] sm:$0x1] %v241_v2 }
  0x51   : > { %268 = vsyncadd [#allocation2], 16  ;;  %s270_s25 = sadd.s32 3, %s985_s5 }
  0x52   : > { %s271_s26 = sld [smem:[#allocation4 + %s270_s25]] }
  0x58   : > { %s272_s27 = scalar_lea.vmem [#allocation5], %s271_s26 }
  0x59   : > { %v292_v3 = vld [vmem:[%s272_s27] sm:$0x1] }
  0x5a   : > { %720 = vst [vmem:[%s991_s10 + $0x3] sm:$0x1] %v292_v3 }
  0x5b   : > { %319 = vsyncadd [#allocation2], 16  ;;  %s321_s28 = sadd.s32 4, %s985_s5 }
  0x5c   : > { %s322_s29 = sld [smem:[#allocation4 + %s321_s28]] }
  0x62   : > { %s323_s30 = scalar_lea.vmem [#allocation5], %s322_s29 }
  0x63   : > { %v343_v4 = vld [vmem:[%s323_s30] sm:$0x1] }
  0x64   : > { %722 = vst [vmem:[%s991_s10 + $0x4] sm:$0x1] %v343_v4 }
  0x65   : > { %370 = vsyncadd [#allocation2], 16  ;;  %s372_s3 = sadd.s32 5, %s985_s5 }
  0x66   : > { %s373_s4 = sld [smem:[#allocation4 + %s372_s3]] }
  0x6c   : > { %s374_s7 = scalar_lea.vmem [#allocation5], %s373_s4 }
  0x6d   : > { %v394_v5 = vld [vmem:[%s374_s7] sm:$0x1] }
  0x6e   : > { %724 = vst [vmem:[%s991_s10 + $0x5] sm:$0x1] %v394_v5 }
  0x6f   : > { %421 = vsyncadd [#allocation2], 16  ;;  %s423_s8 = sadd.s32 6, %s985_s5 }
  0x70   : > { %s424_s9 = sld [smem:[#allocation4 + %s423_s8]] }
  0x76   : > { %s425_s11 = scalar_lea.vmem [#allocation5], %s424_s9 }
  0x77   : > { %v445_v6 = vld [vmem:[%s425_s11] sm:$0x1] }
  0x78   : > { %726 = vst [vmem:[%s991_s10 + $0x6] sm:$0x1] %v445_v6 }
  0x79   : > { %472 = vsyncadd [#allocation2], 16  ;;  %s474_s12 = sadd.s32 7, %s985_s5 }
  0x7a   : > { %s475_s13 = sld [smem:[#allocation4 + %s474_s12]] }
  0x80   : > { %s476_s18 = scalar_lea.vmem [#allocation5], %s475_s13 }
  0x81   : > { %v496_v7 = vld [vmem:[%s476_s18] sm:$0x1] }
  0x82   : > { %728 = vst [vmem:[%s991_s10 + $0x7] sm:$0x1] %v496_v7 }
  0x83   : > { %523 = vsyncadd [#allocation2], 16 }
  0x84   : > { %873 = dma.done.wait [#allocation2], 128 }
  0x85   : > { %874 = vsyncadd [#allocation2], 4294967168  ;;  %s730_s20 = sshll.u32 %s939_s17, 7  ;;  %s541_s27 = sshll.u32 %s991_s10, 4  ;;  %s542_s27 = int_to_ptr.vmem [resolvable:$true] %s541_s27 }
  0x86   : > { %s539_s26 = scalar_lea.hbm %s1046_s2, %s730_s20  ;;  %s528_s5 = scalar_lea.sflag [#allocation7], %s114_s6 }
  0x87   : > { %s825_s28 = scalar_lea.vmem %s542_s27, 128  ;;  %s899_s29 = smov [#allocation8]  }
  0x88   : > { %p826_p11 = scmp.ne.s32.totalorder %s542_s27, %s825_s28  ;;  %s829_s30 = sshll.u32 %s899_s29, 4  ;;  %s830_s30 = int_to_ptr.vmem [resolvable:$false] %s829_s30 }
  0x89   : > { %s831_s3 = scalar_lea.vmem %s830_s30, 256  ;;  %p832_p1 = scmp.lt.s32.totalorder %s542_s27, %s830_s30 }
  0x8a   : > { %p827_p13 = pnand %p826_p11, %p956_p10  ;;  %p833_p2 = scmp.lt.s32.totalorder %s831_s3, %s825_s28 }
  0x8c   : > { %p828_p0 = pneg %p827_p13  ;;  %p834_p3 = por %p833_p2, %p832_p1 }
  0x8e   : > { %p835_p4 = pnand %p834_p3, %p828_p0 }
  0x90   : > { %838 = shalt.err (!%p835_p4)
}
  0x91   : > { %s839_s17 = scalar_lea.hbm %s539_s26, 128  ;;  %s843_s4 = scalar_lea.hbm %s1046_s2, 256 }
  0x92   : > { %p840_p5 = scmp.ne.s32.totalorder %s539_s26, %s839_s17  ;;  %p844_p8 = scmp.lt.s32.totalorder %s539_s26, %s1046_s2 }
  0x93   : > { %p845_p9 = scmp.lt.s32.totalorder %s843_s4, %s839_s17 }
  0x94   : > { %p841_p6 = pnand %p840_p5, %p956_p10 }
  0x95   : > { %p846_p12 = por %p845_p9, %p844_p8 }
  0x96   : > { %p842_p7 = pneg %p841_p6 }
  0x98   : > { %p847_p11 = pnand %p846_p12, %p842_p7 }
  0x9a   : > { %850 = shalt.err (!%p847_p11)
}
  0x9b   : > { %738 = dma.vmem_to_hbm [thread:$0]  (%p956_p10), %s542_s27, 128, %s539_s26, %s528_s5  }
  0x9c PF: > { %p750_p13 = scmp.ge.s32.totalorder %s893_s16, 2  ;;  %s553_s9 = sand.u32 1, %s881_s14  }
  0x9d   : > { %p1050_p0 = scmp.ne.s32.totalorder %s1048_s24, 0  ;;  %s554_s11 = scalar_lea.sflag [#allocation7], %s553_s9 }
  0x9f   : > { %p745_p1 = pnand %p750_p13, %p1050_p0 }
  0xa1   : > { %p746_p2 = pneg %p745_p1 }
  0xa3   : > { %876 = dma.done.wait (%p746_p2), %s554_s11, 128  }
  0xa4   : > { %878 = vsyncadd (%p746_p2), %s554_s11, 4294967168  ;;  %p19_p3 = scmp.ge.s32.totalorder %s943_s19, 4   ;;  %s1051_s14 = smov %s885_s15 }
  0xa5   : > { %s1052_s15 = smov %s889_s0  ;;  %s1053_s0 = smov %s954_s22 }
  0xa6   : > { %s1054_s16 = smov %s943_s19  ;;  %21 = sbr.rel (!%p19_p3) target bundleno = 19 (0x13), region = 396 }
  0xab   :  { %559 = vsyncpa [#allocation6], 1 }
  0xac   :  { %561 = vsyncpa [#allocation6 + $0x1], 1 }
  0xad   :  { %562 = vsyncpa [#allocation7], 1 }
  0xae   :  { %564 = vsyncpa [#allocation7 + $0x1], 1 }
  0xaf   :  { %565 = vsyncmov [#allocation2] }
  0xb2   :  { %s566_s16 = vpop.sfrf %565 }
  0xb3   :  { %p733_p10 = scmp.ne.s32.totalorder %s566_s16, 0 }
  0xb5   :  { %570 = shalt.err (%p733_p10)  }

</bundles_post_ra>
